<compile_context>
chip_gen: v7x
topology: tpu7x:2x2x1
jax: 0.10.0
libtpu: 0.0.40
codegen_flags: <defaults>
</compile_context>

<pallas_src>
import jax
import jax.numpy as jnp
from jax.experimental import pallas as pl
from jax.experimental.pallas import tpu as pltpu

DEPTH = 3  # exercise the full depth>=3 path (permute_vecs=True, use_sign=False)


def _ri_kernel(coef_ref, x_ref, acat_ref, o_ref):
    # coef_ref: (4,) f32 in SMEM -> normalized order coefficients
    c0 = coef_ref[0]
    c1 = coef_ref[1]
    c2 = coef_ref[2]
    c3 = coef_ref[3]

    x = x_ref[...]                                    # (N, D) full rows, resident
    # permute(): torch.roll(vectors, step, dim=1), done on the XLU in-kernel.
    xr1 = pltpu.roll(x, 1, axis=1)
    xr2 = pltpu.roll(x, 2, axis=1)

    # Fused K=3N contraction: [A | A^2 | A^3] @ [c1*X ; c2*roll(X,1) ; c3*roll(X,2)]
    # Accumulation of fst/snd/trd contexts happens inside the MXU.
    x_cat = jnp.concatenate([c1 * x, c2 * xr1, c3 * xr2], axis=0)       # (3N, D)
    ctx = jnp.dot(acat_ref[...], x_cat, preferred_element_type=jnp.float32)  # (tm, D)

    # Single epilogue pass: zeroth-order term + fused contexts.
    tm = o_ref.shape[0]
    row0 = pl.multiple_of(pl.program_id(0) * tm, tm)
    x_rows = x_ref[pl.ds(row0, tm), :]
    o_ref[...] = (c0 * x_rows + ctx).astype(o_ref.dtype)


def ri_layer_forward(index_vectors, adj_cat, order_weights, *, tile_m=None):
    """Pallas forward of RILayer (depth=3, permute_vecs=True, use_sign=False).

    index_vectors: (N, D) f32
    adj_cat:       (N, 3N) f32 = concat([A, A^2 (diag=0), A^3 (diag=0)], axis=1),
                   an __init__-time constant in the original module.
    order_weights: (3,) f32 raw [fst, snd, trd] Embedding(1,1) weights.
    """
    N, D = index_vectors.shape
    assert adj_cat.shape == (N, 3 * N)

    if tile_m is None:
        # 256-wide MXU-friendly row tile; collapses to a single grid step for
        # small graphs (one DMA wave, one compute body).
        tile_m = N if N <= 256 else 256
    assert N % tile_m == 0
    assert tile_m == N or tile_m % 8 == 0

    # --- get_orders(): relu + normalize (tiny scalar glue, not the hot path) ---
    zeroth = jnp.ones((1,), jnp.float32)            # zeroth_order.weight filled with 1.0
    r = jax.nn.relu(jnp.concatenate([zeroth, order_weights.astype(jnp.float32)]))
    coefs = (r / (jnp.sum(r) + 1e-6)).astype(jnp.float32)   # (4,)

    grid = (N // tile_m,)
    return pl.pallas_call(
        _ri_kernel,
        out_shape=jax.ShapeDtypeStruct((N, D), jnp.float32),
        grid=grid,
        in_specs=[
            pl.BlockSpec(memory_space=pltpu.MemorySpace.SMEM),   # coefs (4,)
            # X kept fully resident (constant index_map -> DMA'd once); the
            # full-D block keeps the in-kernel roll correct.
            pl.BlockSpec((N, D), lambda i: (0, 0)),
            # Concatenated adjacency streamed in disjoint row tiles.
            pl.BlockSpec((tile_m, 3 * N), lambda i: (i, 0)),
        ],
        out_specs=pl.BlockSpec((tile_m, D), lambda i: (i, 0)),
        # Disjoint output row tiles, no cross-iteration state -> legal parallel
        # (lets v7x shard the grid across both TensorCores; no-op on v5e/v6e).
        compiler_params=pltpu.CompilerParams(dimension_semantics=("parallel",)),
        # NOTE: VMEM usage here is tiny; for large graphs raise
        # vmem_limit_bytes explicitly (budget vs 64 MiB on v7x / 128 MiB v5e/v6e).
    )(coefs, index_vectors, adj_cat)


def _reference_forward(x, a1, a2, a3, w):
    """Pure-JAX reference mirroring the PyTorch forward."""
    r = jax.nn.relu(jnp.concatenate([jnp.ones((1,), jnp.float32), w]))
    c = r / (jnp.sum(r) + 1e-6)
    fst = a1 @ x
    snd = a2 @ jnp.roll(x, 1, axis=1)
    trd = a3 @ jnp.roll(x, 2, axis=1)
    return c[0] * x + c[1] * fst + c[2] * snd + c[3] * trd


if __name__ == "__main__":
    key = jax.random.PRNGKey(0)
    k_adj, k_x, k_w = jax.random.split(key, 3)

    N, D = 128, 256  # small synthetic graph: 128 nodes, 256-dim index vectors

    # __init__-time constants (deterministic, built in-script):
    # directed adjacency with no self loops; A^2, A^3 with fill_diag(0).
    eye = jnp.eye(N, dtype=jnp.float32)
    adj1 = (jax.random.uniform(k_adj, (N, N)) < 0.1).astype(jnp.float32) * (1.0 - eye)
    adj2 = (adj1 @ adj1) * (1.0 - eye)
    adj3 = (adj2 @ adj1) * (1.0 - eye)
    adj_cat = jnp.concatenate([adj1, adj2, adj3], axis=1)   # (N, 3N), init-time

    # index vectors (forward input) and Embedding(1,1) weights for fst/snd/trd
    # (zeroth is filled with 1.0 per initialize_weights()).
    x = jax.random.normal(k_x, (N, D), jnp.float32)
    order_w = jax.random.normal(k_w, (3,), jnp.float32)

    out = ri_layer_forward(x, adj_cat, order_w)
    out = jax.block_until_ready(out)

    ref = _reference_forward(x, adj1, adj2, adj3, order_w)
    assert out.shape == (N, D) and out.dtype == jnp.float32
    assert jnp.allclose(out, ref, atol=1e-4, rtol=1e-4), "Pallas output != reference"

    print("KERNEL_OK")
</pallas_src>

<mosaic_0001>
module attributes {stable_mosaic.version = 11 : i64} {
  func.func @_ri_kernel(%arg0: i32, %arg1: memref<4xf32, #tpu.memory_space<smem>>, %arg2: memref<128x256xf32, #tpu.memory_space<vmem>>, %arg3: memref<128x384xf32, #tpu.memory_space<vmem>>, %arg4: memref<128x256xf32, #tpu.memory_space<vmem>>) attributes {dimension_semantics = [#tpu.dimension_semantics<parallel>], iteration_bounds = array<i64: 1>, scalar_prefetch = 0 : i64, scratch_operands = 0 : i64, tpu.core_type = #tpu.core_type<tc>, window_params = [{transform_indices = @transform_0, window_bounds = array<i64: 4>}, {pipeline_mode = #tpu.pipeline_mode<synchronous>, transform_indices = @transform_1, window_bounds = array<i64: 128, 256>}, {transform_indices = @transform_2, window_bounds = array<i64: 128, 384>}, {transform_indices = @transform_3, window_bounds = array<i64: 128, 256>}]} {
    %c0 = arith.constant 0 : index
    %0 = memref.load %arg1[%c0] : memref<4xf32, #tpu.memory_space<smem>>
    %c1 = arith.constant 1 : index
    %1 = memref.load %arg1[%c1] : memref<4xf32, #tpu.memory_space<smem>>
    %c2 = arith.constant 2 : index
    %2 = memref.load %arg1[%c2] : memref<4xf32, #tpu.memory_space<smem>>
    %c3 = arith.constant 3 : index
    %3 = memref.load %arg1[%c3] : memref<4xf32, #tpu.memory_space<smem>>
    %c0_0 = arith.constant 0 : index
    %c0_1 = arith.constant 0 : index
    %4 = vector.load %arg2[%c0_0, %c0_1] : memref<128x256xf32, #tpu.memory_space<vmem>>, vector<128x256xf32>
    %c1_i32 = arith.constant 1 : i32
    %5 = tpu.dynamic_rotate %4 by %c1_i32 dim 1 : vector<128x256xf32>, i32 -> vector<128x256xf32>
    %c2_i32 = arith.constant 2 : i32
    %6 = tpu.dynamic_rotate %4 by %c2_i32 dim 1 : vector<128x256xf32>, i32 -> vector<128x256xf32>
    %7 = vector.broadcast %1 : f32 to vector<128x256xf32>
    %8 = arith.mulf %7, %4 : vector<128x256xf32>
    %9 = vector.broadcast %2 : f32 to vector<128x256xf32>
    %10 = arith.mulf %9, %5 : vector<128x256xf32>
    %11 = vector.broadcast %3 : f32 to vector<128x256xf32>
    %12 = arith.mulf %11, %6 : vector<128x256xf32>
    %13 = tpu.concatenate %8, %10, %12 in 0 : vector<128x256xf32>, vector<128x256xf32>, vector<128x256xf32> -> vector<384x256xf32>
    %c0_2 = arith.constant 0 : index
    %c0_3 = arith.constant 0 : index
    %14 = vector.load %arg3[%c0_2, %c0_3] : memref<128x384xf32, #tpu.memory_space<vmem>>, vector<128x384xf32>
    %cst = arith.constant dense<0.000000e+00> : vector<128x256xf32>
    %15 = tpu.matmul %14, %13, %cst {dimension_numbers = #tpu.dot_dimension_numbers<[1], [0], [0], [1], [0, 0, 1, 1], [], []>} : vector<128x384xf32>, vector<384x256xf32>, vector<128x256xf32> -> vector<128x256xf32>
    %c128_i32 = arith.constant 128 : i32
    %16 = arith.muli %arg0, %c128_i32 : i32
    %17 = tpu.assume_multiple %16, 128 : i32
    %18 = arith.index_cast %17 : i32 to index
    %c0_4 = arith.constant 0 : index
    %19 = vector.load %arg2[%18, %c0_4] : memref<128x256xf32, #tpu.memory_space<vmem>>, vector<128x256xf32>
    %20 = vector.broadcast %0 : f32 to vector<128x256xf32>
    %21 = arith.mulf %20, %19 : vector<128x256xf32>
    %22 = arith.addf %21, %15 : vector<128x256xf32>
    %c0_5 = arith.constant 0 : index
    %c0_6 = arith.constant 0 : index
    %23 = vector.load %arg4[%c0_5, %c0_6] : memref<128x256xf32, #tpu.memory_space<vmem>>, vector<128x256xf32>
    tpu.vector_store %arg4[%c0_5, %c0_6], %22 {strides = array<i32>} : memref<128x256xf32, #tpu.memory_space<vmem>>, vector<128x256xf32>,
    return
  }
  func.func @transform_0(%arg0: i32) -> i32 {
    %c0_i32 = arith.constant 0 : i32
    %c0_i32_0 = arith.constant 0 : i32
    return %c0_i32 : i32
  }
  func.func @transform_1(%arg0: i32) -> (i32, i32) {
    %c0_i32 = arith.constant 0 : i32
    %c0_i32_0 = arith.constant 0 : i32
    %c0_i32_1 = arith.constant 0 : i32
    return %c0_i32, %c0_i32_0 : i32, i32
  }
  func.func @transform_2(%arg0: i32) -> (i32, i32) {
    %c0_i32 = arith.constant 0 : i32
    %c0_i32_0 = arith.constant 0 : i32
    return %arg0, %c0_i32 : i32, i32
  }
  func.func @transform_3(%arg0: i32) -> (i32, i32) {
    %c0_i32 = arith.constant 0 : i32
    %c0_i32_0 = arith.constant 0 : i32
    return %arg0, %c0_i32 : i32, i32
  }
}

</mosaic_0001>

<bundles_post_ra>
// kernel: tpu_custom_call.1
= control target key start
LH: loop header
LB: loop body
LE: loop exit
PB: predicated region body
PF: predicated region fallthrough
CT: control target
= control target key end

     0   :  { %8 = vsyncpa [#allocation5], 0  ;;  %s1690_s0 = inlined_call_operand.hbm [shape: f32[4], index: 0, kind: input, shape index: {}]   ;;  %s1691_s1 = inlined_call_operand.hbm [shape: f32[128,256], index: 1, kind: input, shape index: {}]   ;;  %s1692_s2 = inlined_call_operand.hbm [shape: f32[128,384], index: 2, kind: input, shape index: {}]   ;;  %s1693_s3 = inlined_call_operand.hbm [shape: f32[128,256], index: 3, kind: output, shape index: {}]  }
   0x1   :  { %9 = vsyncpa [#allocation3], 0 }
   0x2   :  { %10 = vsyncpa [#allocation8], 0 }
   0x3   :  { %11 = vsyncpa [#allocation4], 0  ;;  %s1053_s14 = scalar_lea.hbm %s1690_s0, 16 }
   0x4   :  { %p1054_p0 = scmp.ne.s32.totalorder %s1690_s0, %s1053_s14  ;;  %p1057_p1 = scmp.lt.u32.totalorder %s1053_s14, %s1690_s0 }
   0x6   :  { %p1059_p2 = pnand %p1057_p1, %p1054_p0 }
   0x8   :  { %1062 = shalt.err (!%p1059_p2)
}
   0x9   :  { %s1137_s19 = smov [#allocation2]   ;;  %s1138_s22 = smov [#allocation6]  }
   0xa   :  { %19 = dma.hbm_to_smem %s1690_s0, 16, %s1137_s19, [#allocation5]  }
   0xb   :  { %s25_s23 = sshll.u32 %s1138_s22, 4  ;;  %s1063_s26 = scalar_lea.hbm %s1691_s1, 4096  ;;  %s26_s23 = int_to_ptr.vmem [resolvable:$true] %s25_s23 }
   0xc   :  { %p1064_p3 = scmp.ne.s32.totalorder %s1691_s1, %s1063_s26  ;;  %p1067_p4 = scmp.lt.u32.totalorder %s1063_s26, %s1691_s1 }
   0xe   :  { %p1069_p5 = pnand %p1067_p4, %p1064_p3 }
  0x10   :  { %1072 = shalt.err (!%p1069_p5)
}
  0x11   :  { %s1073_s4 = scalar_lea.vmem %s26_s23, 4096  ;;  %p1078_p7 = scmp.lt.s32.totalorder %s26_s23, %s26_s23 }
  0x12   :  { %p1074_p6 = scmp.ne.s32.totalorder %s26_s23, %s1073_s4  ;;  %p1079_p8 = scmp.lt.s32.totalorder %s1073_s4, %s1073_s4 }
  0x14   :  { %p1080_p9 = por %p1079_p8, %p1078_p7 }
  0x16   :  { %p1081_p10 = pnand %p1080_p9, %p1074_p6 }
  0x18   :  { %1084 = shalt.err (!%p1081_p10)
}
  0x19   :  { %s1139_s0 = smov 256   ;;  %s1140_s5 = smov 16  }
  0x1a   :  { %31 = dma.hbm_to_vmem [thread:$0]  %s1691_s1, 4096, %s26_s23, [#allocation3], %s1139_s0, %s1139_s0, %s1140_s5  }
  0x1b   :  { %s1141_s8 = smov [#allocation7]   ;;  %s1085_s12 = scalar_lea.hbm %s1692_s2, 6144 }
  0x1c   :  { %s37_s9 = sshll.u32 %s1141_s8, 4  ;;  %p1086_p11 = scmp.ne.s32.totalorder %s1692_s2, %s1085_s12  ;;  %s38_s9 = int_to_ptr.vmem [resolvable:$true] %s37_s9 }
  0x1d   :  { %p1089_p12 = scmp.lt.u32.totalorder %s1085_s12, %s1692_s2 }
  0x1f   :  { %p1091_p13 = pnand %p1089_p12, %p1086_p11 }
  0x21   :  { %1094 = shalt.err (!%p1091_p13)
}
  0x22   :  { %s1095_s17 = scalar_lea.vmem %s38_s9, 6144  ;;  %p1100_p1 = scmp.lt.s32.totalorder %s38_s9, %s38_s9 }
  0x23   :  { %p1096_p0 = scmp.ne.s32.totalorder %s38_s9, %s1095_s17  ;;  %p1101_p2 = scmp.lt.s32.totalorder %s1095_s17, %s1095_s17 }
  0x25   :  { %p1102_p3 = por %p1101_p2, %p1100_p1 }
  0x27   :  { %p1103_p4 = pnand %p1102_p3, %p1096_p0 }
  0x29   :  { %1106 = shalt.err (!%p1103_p4)
}
  0x2a   :  { %s1142_s1 = smov 384   ;;  %s1143_s18 = smov 24  }
  0x2b   :  { %43 = dma.hbm_to_vmem [thread:$0]  %s1692_s2, 6144, %s38_s9, [#allocation8], %s1142_s1, %s1142_s1, %s1143_s18  }
  0x2c   :  { %1129 = dma.done.wait [#allocation5], 16  }
  0x2d   :  { %1130 = vsyncadd [#allocation5], 4294967280 }
  0x2e   :  { %1131 = dma.done.wait [#allocation3], 4096  }
  0x2f   :  { %1132 = vsyncadd [#allocation3], 4294963200 }
  0x30   :  { %1133 = dma.done.wait [#allocation8], 6144  }
  0x31   :  { %1134 = vsyncadd [#allocation8], 4294961152 }
  0x32   :  { %53 = sfence }
  0x33   :  { %v59_v0 = vld [vmem:[#allocation6 + $0x8] sm:$0xff]  ;;  %v58_v1 = vld [vmem:[#allocation6] sm:$0xff]  ;;  %s1144_s21 = smov 1   ;;  %v61_v2 = vld [vmem:[#allocation6 + $0x18] sm:$0xff]  ;;  %s911_s22 = sld [smem:[#allocation2 + $0x1]] }
  0x34   :  { %122 = vrot.lane.b32.xlu1 %v59_v0, %s1144_s21  ;;  %90 = vrot.lane.b32.xlu0 %v58_v1, %s1144_s21  ;;  %v60_v3 = vld [vmem:[#allocation6 + $0x10] sm:$0xff]  ;;  %s1145_s2 = smov 2   ;;  %v1215_v5 = vld [vmem:[#allocation6 + $0x38] sm:$0xff]  ;;  %v1217_v6 = vld [vmem:[#allocation6 + $0x28] sm:$0xff]  ;;  %s912_s23 = sld [smem:[#allocation2 + $0x2]] }
  0x35   :  { %v64_v11 = vld [vmem:[#allocation6 + $0x30] sm:$0xff]  ;;  %v62_v12 = vld [vmem:[#allocation6 + $0x20] sm:$0xff]  ;;  %v1231_v17 = vld [vmem:[#allocation6 + $0x58] sm:$0xff]  ;;  %s913_s24 = sld [smem:[#allocation2 + $0x3]]  ;;  %s54_s25 = sld [smem:[#allocation2]] }
  0x36   :  { %v1233_v18 = vld [vmem:[#allocation6 + $0x48] sm:$0xff]  ;;  %v1241_v24 = vld [vmem:[#allocation6 + $0x50] sm:$0xff]  ;;  %v1243_v25 = vld [vmem:[#allocation6 + $0x40] sm:$0xff]  ;;  %s1147_s26 = smov [#allocation9]  }
  0x37   :  { %v1249_v28 = vld [vmem:[#allocation6 + $0x78] sm:$0xff]  ;;  %v1251_v29 = vld [vmem:[#allocation6 + $0x68] sm:$0xff]  ;;  %v1261_v34 = vld [vmem:[#allocation6 + $0x70] sm:$0xff]  ;;  %s895_s27 = sshll.u32 %s1147_s26, 4  ;;  %s896_s27 = int_to_ptr.vmem [resolvable:$true] %s895_s27 }
  0x38   :  { %124 = vrot.lane.b32.xlu1 %v61_v2, %s1144_s21  ;;  %92 = vrot.lane.b32.xlu0 %v60_v3, %s1144_s21  ;;  %v1263_v35 = vld [vmem:[#allocation6 + $0x60] sm:$0xff]  ;;  %v1269_v38 = vld [vmem:[#allocation6 + $0x98] sm:$0xff]  ;;  %v1271_v39 = vld [vmem:[#allocation6 + $0x88] sm:$0xff]  ;;  %s1107_s28 = scalar_lea.vmem %s896_s27, 4096  ;;  %p1112_p6 = scmp.lt.s32.totalorder %s896_s27, %s896_s27 }
  0x39   :  { %v1213_v4 = vstv %s911_s22  ;;  %v1279_v44 = vld [vmem:[#allocation6 + $0x90] sm:$0xff]  ;;  %v1281_v45 = vld [vmem:[#allocation6 + $0x80] sm:$0xff]  ;;  %v1287_v48 = vld [vmem:[#allocation6 + $0xb8] sm:$0xff]  ;;  %p1108_p5 = scmp.ne.s32.totalorder %s896_s27, %s1107_s28  ;;  %p1113_p7 = scmp.lt.s32.totalorder %s1107_s28, %s1107_s28 }
  0x3a   :  { %v294_v7 = vmul.f32 %v1213_v4, %v1215_v5  ;;  %v292_v8 = vmul.f32 %v1213_v4, %v1217_v6  ;;  %v288_v9 = vmul.f32 %v1213_v4, %v59_v0  ;;  %v290_v10 = vmul.f32 %v1213_v4, %v61_v2  ;;  %v1289_v49 = vld [vmem:[#allocation6 + $0xa8] sm:$0xff]  ;;  %v1299_v54 = vld [vmem:[#allocation6 + $0xb0] sm:$0xff]  ;;  %v1301_v55 = vld [vmem:[#allocation6 + $0xa0] sm:$0xff] }
  0x3b   :  { %v287_v13 = vmul.f32 %v1213_v4, %v58_v1  ;;  %v289_v14 = vmul.f32 %v1213_v4, %v60_v3  ;;  %v293_v15 = vmul.f32 %v1213_v4, %v64_v11  ;;  %v291_v16 = vmul.f32 %v1213_v4, %v62_v12  ;;  %v1307_v58 = vld [vmem:[#allocation6 + $0xd8] sm:$0xff]  ;;  %v1309_v59 = vld [vmem:[#allocation6 + $0xc8] sm:$0xff]  ;;  %p1114_p8 = por %p1113_p7, %p1112_p6 }
  0x3c   :  { %191 = vrot.lane.b32.xlu1 %v60_v3, %s1145_s2  ;;  %189 = vrot.lane.b32.xlu0 %v58_v1, %s1145_s2  ;;  %v914_v19 = vpack.c.bf16 %v290_v10, %v288_v9  ;;  %v298_v20 = vmul.f32 %v1213_v4, %v1231_v17  ;;  %v296_v21 = vmul.f32 %v1213_v4, %v1233_v18  ;;  %v1321_v1 = vld [vmem:[#allocation6 + $0xe8] sm:$0xff]  ;;  %v82_v3 = vld [vmem:[#allocation6 + $0xc0] sm:$0xff] }
  0x3d   :  { %v916_v22 = vpack.c.bf16 %v289_v14, %v287_v13  ;;  %v918_v23 = vpack.c.bf16 %v294_v7, %v292_v8  ;;  %v297_v26 = vmul.f32 %v1213_v4, %v1241_v24  ;;  %v295_v27 = vmul.f32 %v1213_v4, %v1243_v25  ;;  %p1115_p9 = pnand %p1114_p8, %p1108_p5 }
  0x3e   :  { %915 = vmatprep.subr.bf16.mxu1 %v914_v19  ;;  %v920_v30 = vpack.c.bf16 %v293_v15, %v291_v16  ;;  %v302_v31 = vmul.f32 %v1213_v4, %v1249_v28  ;;  %v300_v32 = vmul.f32 %v1213_v4, %v1251_v29  ;;  %v922_v33 = vpack.c.bf16 %v298_v20, %v296_v21 }
  0x3f   :  { %917 = vmatpush1.bf16.msra.mxu1 %v916_v22  ;;  %v301_v36 = vmul.f32 %v1213_v4, %v1261_v34  ;;  %v299_v37 = vmul.f32 %v1213_v4, %v1263_v35  ;;  %v924_v40 = vpack.c.bf16 %v297_v26, %v295_v27  ;;  %v306_v41 = vmul.f32 %v1213_v4, %v1269_v38 }
  0x40   :  { %223 = vrot.lane.b32.xlu1 %v61_v2, %s1145_s2  ;;  %221 = vrot.lane.b32.xlu0 %v59_v0, %s1145_s2  ;;  %v304_v42 = vmul.f32 %v1213_v4, %v1271_v39  ;;  %v926_v43 = vpack.c.bf16 %v302_v31, %v300_v32  ;;  %v305_v46 = vmul.f32 %v1213_v4, %v1279_v44  ;;  %v1319_v0 = vld [vmem:[#allocation6 + $0xf8] sm:$0xff]  ;;  %v84_v2 = vld [vmem:[#allocation6 + $0xd0] sm:$0xff]  ;;  %v1418_v22 = vstv %s912_s23 }
  0x41   :  { %919 = vmatprep.subr.bf16.mxu1 %v918_v23  ;;  %v303_v47 = vmul.f32 %v1213_v4, %v1281_v45  ;;  %v928_v50 = vpack.c.bf16 %v301_v36, %v299_v37  ;;  %v310_v51 = vmul.f32 %v1213_v4, %v1287_v48  ;;  %v308_v52 = vmul.f32 %v1213_v4, %v1289_v49 }
  0x42   :  { %v930_v53 = vpack.c.bf16 %v306_v41, %v304_v42  ;;  %v309_v56 = vmul.f32 %v1213_v4, %v1299_v54  ;;  %v307_v57 = vmul.f32 %v1213_v4, %v1301_v55  ;;  %v314_v61 = vmul.f32 %v1213_v4, %v1307_v58 }
  0x43   :  { %921 = vmatpush1.bf16.msra.mxu1 %v920_v30  ;;  %v932_v60 = vpack.c.bf16 %v305_v46, %v303_v47  ;;  %v312_v62 = vmul.f32 %v1213_v4, %v1309_v59  ;;  %v934_v63 = vpack.c.bf16 %v310_v51, %v308_v52  ;;  %v318_v8 = vmul.f32 %v1213_v4, %v1319_v0 }
  0x44   :  { %96 = vrot.lane.b32.xlu1 %v64_v11, %s1144_s21  ;;  %94 = vrot.lane.b32.xlu0 %v62_v12, %s1144_s21  ;;  %v936_v7 = vpack.c.bf16 %v309_v56, %v307_v57  ;;  %v316_v9 = vmul.f32 %v1213_v4, %v1321_v1  ;;  %v1146_v27 = vmov 0.0  }
  0x45   :  { %923 = vmatprep.subr.bf16.mxu1 %v922_v33  ;;  %v938_v10 = vpack.c.bf16 %v314_v61, %v312_v62  ;;  %658 = vmatprep.mubr.f32.mxu0 %v1146_v27 }
  0x46   :  { %v942_v16 = vpack.c.bf16 %v318_v8, %v316_v9 }
  0x47   :  { %925 = vmatpush1.bf16.msra.mxu1 %v924_v40 }
  0x48   :  { %128 = vrot.lane.b32.xlu1 %v1215_v5, %s1144_s21  ;;  %126 = vrot.lane.b32.xlu0 %v1217_v6, %s1144_s21 }
  0x49   :  { %927 = vmatprep.subr.bf16.mxu1 %v926_v43 }
  0x4b   :  { %929 = vmatpush1.bf16.msra.mxu1 %v928_v50 }
  0x4c   :  { %195 = vrot.lane.b32.xlu1 %v64_v11, %s1145_s2  ;;  %193 = vrot.lane.b32.xlu0 %v62_v12, %s1145_s2  ;;  %v1333_v11 = vld [vmem:[#allocation6 + $0xf0] sm:$0xff]  ;;  %v1335_v12 = vld [vmem:[#allocation6 + $0xe0] sm:$0xff] }
  0x4d   :  { %931 = vmatprep.subr.bf16.mxu1 %v930_v53  ;;  %v317_v13 = vmul.f32 %v1213_v4, %v1333_v11  ;;  %v315_v14 = vmul.f32 %v1213_v4, %v1335_v12 }
  0x4f   :  { %933 = vmatpush1.bf16.msra.mxu1 %v932_v60  ;;  %v944_v19 = vpack.c.bf16 %v317_v13, %v315_v14 }
  0x50   :  { %227 = vrot.lane.b32.xlu1 %v1215_v5, %s1145_s2  ;;  %225 = vrot.lane.b32.xlu0 %v1217_v6, %s1145_s2  ;;  %v313_v5 = vmul.f32 %v1213_v4, %v84_v2  ;;  %v311_v6 = vmul.f32 %v1213_v4, %v82_v3  ;;  %v154_v4 = vlaneseq }
  0x51   :  { %935 = vmatprep.subr.bf16.mxu1 %v934_v63 }
  0x52   :  { %v940_v15 = vpack.c.bf16 %v313_v5, %v311_v6 }
  0x53   :  { %937 = vmatpush1.bf16.msra.mxu1 %v936_v7 }
  0x54   :  { %100 = vrot.lane.b32.xlu1 %v1241_v24, %s1144_s21  ;;  %98 = vrot.lane.b32.xlu0 %v1243_v25, %s1144_s21 }
  0x55   :  { %939 = vmatprep.subr.bf16.mxu1 %v938_v10 }
  0x57   :  { %941 = vmatpush1.bf16.msra.mxu1 %v940_v15 }
  0x58   :  { %132 = vrot.lane.b32.xlu1 %v1231_v17, %s1144_s21  ;;  %130 = vrot.lane.b32.xlu0 %v1233_v18, %s1144_s21 }
  0x59   :  { %943 = vmatprep.subr.bf16.mxu1 %v942_v16 }
  0x5b   :  { %945 = vmatpush1.bf16.msra.mxu1 %v944_v19 }
  0x5c   :  { %199 = vrot.lane.b32.xlu1 %v1241_v24, %s1145_s2  ;;  %197 = vrot.lane.b32.xlu0 %v1243_v25, %s1145_s2  ;;  %v386_v24 = vld [vmem:[#allocation7 + $0x8] sm:$0xff] }
  0x5d   :  { %497 = vmatprep.mubr.f32.mxu1 %v386_v24 }
  0x60   :  { %231 = vrot.lane.b32.xlu1 %v1231_v17, %s1145_s2  ;;  %229 = vrot.lane.b32.xlu0 %v1233_v18, %s1145_s2  ;;  %v1409_v17 = vand.u32 127, %v154_v4 }
  0x62   :  { %vm156_vm0 = vcmp.lt.s32.totalorder %v1409_v17, 1  ;;  %vm253_vm1 = vcmp.lt.s32.totalorder %v1409_v17, 2  ;;  %v391_v17 = vld [vmem:[#allocation7 + $0x30] sm:$0xff] }
  0x64   :  { %104 = vrot.lane.b32.xlu1 %v1261_v34, %s1144_s21  ;;  %102 = vrot.lane.b32.xlu0 %v1263_v35, %s1144_s21 }
  0x68   :  { %136 = vrot.lane.b32.xlu1 %v1249_v28, %s1144_s21  ;;  %134 = vrot.lane.b32.xlu0 %v1251_v29, %s1144_s21 }
  0x6c   :  { %203 = vrot.lane.b32.xlu1 %v1261_v34, %s1145_s2  ;;  %201 = vrot.lane.b32.xlu0 %v1263_v35, %s1145_s2 }
  0x70   :  { %235 = vrot.lane.b32.xlu1 %v1249_v28, %s1145_s2  ;;  %233 = vrot.lane.b32.xlu0 %v1251_v29, %s1145_s2 }
  0x74   :  { %108 = vrot.lane.b32.xlu1 %v1279_v44, %s1144_s21  ;;  %106 = vrot.lane.b32.xlu0 %v1281_v45, %s1144_s21 }
  0x78   :  { %140 = vrot.lane.b32.xlu1 %v1269_v38, %s1144_s21  ;;  %138 = vrot.lane.b32.xlu0 %v1271_v39, %s1144_s21 }
  0x7c   :  { %207 = vrot.lane.b32.xlu1 %v1279_v44, %s1145_s2  ;;  %205 = vrot.lane.b32.xlu0 %v1281_v45, %s1145_s2 }
  0x80   :  { %239 = vrot.lane.b32.xlu1 %v1269_v38, %s1145_s2  ;;  %237 = vrot.lane.b32.xlu0 %v1271_v39, %s1145_s2  ;;  %v1444_v38 = vstv %s913_s24 }
  0x84   :  { %112 = vrot.lane.b32.xlu1 %v1299_v54, %s1144_s21  ;;  %110 = vrot.lane.b32.xlu0 %v1301_v55, %s1144_s21 }
  0x88   :  { %144 = vrot.lane.b32.xlu1 %v1287_v48, %s1144_s21  ;;  %142 = vrot.lane.b32.xlu0 %v1289_v49, %s1144_s21 }
  0x8c   :  { %211 = vrot.lane.b32.xlu1 %v1299_v54, %s1145_s2  ;;  %209 = vrot.lane.b32.xlu0 %v1301_v55, %s1145_s2 }
  0x90   :  { %243 = vrot.lane.b32.xlu1 %v1287_v48, %s1145_s2  ;;  %241 = vrot.lane.b32.xlu0 %v1289_v49, %s1145_s2 }
  0x94   :  { %116 = vrot.lane.b32.xlu1 %v84_v2, %s1144_s21  ;;  %114 = vrot.lane.b32.xlu0 %v82_v3, %s1144_s21 }
  0x98   :  { %148 = vrot.lane.b32.xlu1 %v1307_v58, %s1144_s21  ;;  %146 = vrot.lane.b32.xlu0 %v1309_v59, %s1144_s21 }
  0x9c   :  { %215 = vrot.lane.b32.xlu1 %v84_v2, %s1145_s2  ;;  %213 = vrot.lane.b32.xlu0 %v82_v3, %s1145_s2 }
  0xa0   :  { %247 = vrot.lane.b32.xlu1 %v1307_v58, %s1145_s2  ;;  %245 = vrot.lane.b32.xlu0 %v1309_v59, %s1145_s2 }
  0xa4   :  { %120 = vrot.lane.b32.xlu1 %v1333_v11, %s1144_s21  ;;  %118 = vrot.lane.b32.xlu0 %v1335_v12, %s1144_s21 }
  0xa6   :  { %v123_v18 = vpop.permute.xlu1 %122  ;;  %v91_v20 = vpop.permute.xlu0 %90 }
  0xa7   :  { %v173_v21 = vsel %vm156_vm0, %v123_v18, %v91_v20  ;;  %v157_v23 = vsel %vm156_vm0, %v91_v20, %v123_v18 }
  0xa8   :  { %152 = vrot.lane.b32.xlu1 %v1319_v0, %s1144_s21  ;;  %150 = vrot.lane.b32.xlu0 %v1321_v1, %s1144_s21  ;;  %v320_v28 = vmul.f32 %v1418_v22, %v173_v21  ;;  %v321_v31 = vmul.f32 %v1418_v22, %v157_v23 }
  0xaa   :  { %v125_v25 = vpop.permute.xlu1 %124  ;;  %v93_v26 = vpop.permute.xlu0 %92 }
  0xab   :  { %v158_v29 = vsel %vm156_vm0, %v93_v26, %v125_v25  ;;  %v174_v30 = vsel %vm156_vm0, %v125_v25, %v93_v26 }
  0xac   :  { %v322_v32 = vmul.f32 %v1418_v22, %v174_v30  ;;  %v323_v33 = vmul.f32 %v1418_v22, %v158_v29  ;;  %219 = vrot.lane.b32.xlu1 %v1333_v11, %s1145_s2  ;;  %217 = vrot.lane.b32.xlu0 %v1335_v12, %s1145_s2 }
  0xae   :  { %v192_v34 = vpop.permute.xlu1 %191  ;;  %v190_v35 = vpop.permute.xlu0 %189  ;;  %v946_v36 = vpack.c.bf16 %v323_v33, %v321_v31  ;;  %v948_v37 = vpack.c.bf16 %v322_v32, %v320_v28 }
  0xb0   :  { %251 = vrot.lane.b32.xlu1 %v1319_v0, %s1145_s2  ;;  %249 = vrot.lane.b32.xlu0 %v1321_v1, %s1145_s2 }
  0xb1   :  { %947 = vmatprep.subr.bf16.mxu1 %v946_v36 }
  0xb2   :  { %949 = vmatpush1.bf16.msra.mxu1 %v948_v37  ;;  %v224_v39 = vpop.permute.xlu1 %223  ;;  %v222_v40 = vpop.permute.xlu0 %221 }
  0xb3   :  { %v255_v41 = vsel %vm253_vm1, %v192_v34, %v224_v39  ;;  %v271_v42 = vsel %vm253_vm1, %v224_v39, %v192_v34  ;;  %v254_v43 = vsel %vm253_vm1, %v190_v35, %v222_v40  ;;  %v270_v44 = vsel %vm253_vm1, %v222_v40, %v190_v35 }
  0xb4   :  { %v355_v45 = vmul.f32 %v1444_v38, %v271_v42  ;;  %v353_v46 = vmul.f32 %v1444_v38, %v270_v44  ;;  %v354_v47 = vmul.f32 %v1444_v38, %v254_v43  ;;  %v356_v48 = vmul.f32 %v1444_v38, %v255_v41 }
  0xb6   :  { %v97_v49 = vpop.permute.xlu1 %96  ;;  %v95_v50 = vpop.permute.xlu0 %94  ;;  %v978_v51 = vpack.c.bf16 %v356_v48, %v354_v47  ;;  %v980_v52 = vpack.c.bf16 %v355_v45, %v353_v46 }
  0xb8   :  { %979 = vmatprep.subr.bf16.mxu0 %v978_v51 }
  0xb9   :  { %981 = vmatpush1.bf16.msra.mxu0 %v980_v52 }
  0xba   :  { %v129_v53 = vpop.permute.xlu1 %128  ;;  %v127_v54 = vpop.permute.xlu0 %126 }
  0xbb   :  { %v160_v55 = vsel %vm156_vm0, %v97_v49, %v129_v53  ;;  %v176_v56 = vsel %vm156_vm0, %v129_v53, %v97_v49  ;;  %v159_v57 = vsel %vm156_vm0, %v95_v50, %v127_v54  ;;  %v175_v58 = vsel %vm156_vm0, %v127_v54, %v95_v50 }
  0xbc   :  { %v326_v59 = vmul.f32 %v1418_v22, %v176_v56  ;;  %v327_v60 = vmul.f32 %v1418_v22, %v160_v55  ;;  %v324_v61 = vmul.f32 %v1418_v22, %v175_v58  ;;  %v325_v62 = vmul.f32 %v1418_v22, %v159_v57 }
  0xbe   :  { %v196_v63 = vpop.permute.xlu1 %195  ;;  %v194_v0 = vpop.permute.xlu0 %193  ;;  %v950_v1 = vpack.c.bf16 %v327_v60, %v325_v62  ;;  %v952_v2 = vpack.c.bf16 %v326_v59, %v324_v61 }
  0xc0   :  { %951 = vmatprep.subr.bf16.mxu1 %v950_v1 }
  0xc1   :  { %953 = vmatpush1.bf16.msra.mxu1 %v952_v2 }
  0xc2   :  { %v228_v3 = vpop.permute.xlu1 %227  ;;  %v226_v5 = vpop.permute.xlu0 %225 }
  0xc3   :  { %v257_v6 = vsel %vm253_vm1, %v196_v63, %v228_v3  ;;  %v273_v7 = vsel %vm253_vm1, %v228_v3, %v196_v63  ;;  %v256_v8 = vsel %vm253_vm1, %v194_v0, %v226_v5  ;;  %v272_v9 = vsel %vm253_vm1, %v226_v5, %v194_v0 }
  0xc4   :  { %v359_v10 = vmul.f32 %v1444_v38, %v273_v7  ;;  %v360_v11 = vmul.f32 %v1444_v38, %v257_v6  ;;  %v357_v12 = vmul.f32 %v1444_v38, %v272_v9  ;;  %v358_v13 = vmul.f32 %v1444_v38, %v256_v8 }
  0xc6   :  { %v101_v14 = vpop.permute.xlu1 %100  ;;  %v99_v15 = vpop.permute.xlu0 %98  ;;  %v982_v16 = vpack.c.bf16 %v360_v11, %v358_v13  ;;  %v984_v19 = vpack.c.bf16 %v359_v10, %v357_v12 }
  0xc8   :  { %983 = vmatprep.subr.bf16.mxu0 %v982_v16 }
  0xc9   :  { %985 = vmatpush1.bf16.msra.mxu0 %v984_v19 }
  0xca   :  { %v133_v4 = vpop.permute.xlu1 %132  ;;  %v131_v18 = vpop.permute.xlu0 %130 }
  0xcb   :  { %v162_v20 = vsel %vm156_vm0, %v101_v14, %v133_v4  ;;  %v178_v21 = vsel %vm156_vm0, %v133_v4, %v101_v14  ;;  %v161_v23 = vsel %vm156_vm0, %v99_v15, %v131_v18  ;;  %v177_v24 = vsel %vm156_vm0, %v131_v18, %v99_v15 }
  0xcc   :  { %v330_v25 = vmul.f32 %v1418_v22, %v178_v21  ;;  %v331_v26 = vmul.f32 %v1418_v22, %v162_v20  ;;  %v328_v28 = vmul.f32 %v1418_v22, %v177_v24  ;;  %v329_v29 = vmul.f32 %v1418_v22, %v161_v23 }
  0xce   :  { %v200_v30 = vpop.permute.xlu1 %199  ;;  %v198_v31 = vpop.permute.xlu0 %197  ;;  %v954_v32 = vpack.c.bf16 %v331_v26, %v329_v29  ;;  %v956_v33 = vpack.c.bf16 %v330_v25, %v328_v28 }
  0xd0   :  { %955 = vmatprep.subr.bf16.mxu1 %v954_v32 }
  0xd1   :  { %957 = vmatpush1.bf16.msra.mxu1 %v956_v33 }
  0xd2   :  { %v232_v34 = vpop.permute.xlu1 %231  ;;  %v230_v35 = vpop.permute.xlu0 %229 }
  0xd3   :  { %v259_v36 = vsel %vm253_vm1, %v200_v30, %v232_v34  ;;  %v275_v37 = vsel %vm253_vm1, %v232_v34, %v200_v30  ;;  %v258_v39 = vsel %vm253_vm1, %v198_v31, %v230_v35  ;;  %v274_v40 = vsel %vm253_vm1, %v230_v35, %v198_v31 }
  0xd4   :  { %v363_v41 = vmul.f32 %v1444_v38, %v275_v37  ;;  %v364_v42 = vmul.f32 %v1444_v38, %v259_v36  ;;  %v361_v43 = vmul.f32 %v1444_v38, %v274_v40  ;;  %v362_v44 = vmul.f32 %v1444_v38, %v258_v39 }
  0xd6   :  { %v105_v45 = vpop.permute.xlu1 %104  ;;  %v103_v46 = vpop.permute.xlu0 %102  ;;  %v986_v47 = vpack.c.bf16 %v364_v42, %v362_v44  ;;  %v988_v48 = vpack.c.bf16 %v363_v41, %v361_v43 }
  0xd8   :  { %987 = vmatprep.subr.bf16.mxu0 %v986_v47 }
  0xd9   :  { %989 = vmatpush1.bf16.msra.mxu0 %v988_v48 }
  0xda   :  { %v137_v49 = vpop.permute.xlu1 %136  ;;  %v135_v50 = vpop.permute.xlu0 %134 }
  0xdb   :  { %v164_v51 = vsel %vm156_vm0, %v105_v45, %v137_v49  ;;  %v180_v52 = vsel %vm156_vm0, %v137_v49, %v105_v45  ;;  %v163_v53 = vsel %vm156_vm0, %v103_v46, %v135_v50  ;;  %v179_v54 = vsel %vm156_vm0, %v135_v50, %v103_v46 }
  0xdc   :  { %v334_v55 = vmul.f32 %v1418_v22, %v180_v52  ;;  %v335_v56 = vmul.f32 %v1418_v22, %v164_v51  ;;  %v332_v57 = vmul.f32 %v1418_v22, %v179_v54  ;;  %v333_v58 = vmul.f32 %v1418_v22, %v163_v53 }
  0xde   :  { %v204_v59 = vpop.permute.xlu1 %203  ;;  %v202_v60 = vpop.permute.xlu0 %201  ;;  %v958_v61 = vpack.c.bf16 %v335_v56, %v333_v58  ;;  %v960_v62 = vpack.c.bf16 %v334_v55, %v332_v57 }
  0xe0   :  { %959 = vmatprep.subr.bf16.mxu1 %v958_v61 }
  0xe1   :  { %961 = vmatpush1.bf16.msra.mxu1 %v960_v62 }
  0xe2   :  { %v236_v63 = vpop.permute.xlu1 %235  ;;  %v234_v0 = vpop.permute.xlu0 %233 }
  0xe3   :  { %v261_v1 = vsel %vm253_vm1, %v204_v59, %v236_v63  ;;  %v277_v2 = vsel %vm253_vm1, %v236_v63, %v204_v59  ;;  %v260_v3 = vsel %vm253_vm1, %v202_v60, %v234_v0  ;;  %v276_v5 = vsel %vm253_vm1, %v234_v0, %v202_v60 }
  0xe4   :  { %v367_v6 = vmul.f32 %v1444_v38, %v277_v2  ;;  %v368_v7 = vmul.f32 %v1444_v38, %v261_v1  ;;  %v365_v8 = vmul.f32 %v1444_v38, %v276_v5  ;;  %v366_v9 = vmul.f32 %v1444_v38, %v260_v3 }
  0xe6   :  { %v109_v10 = vpop.permute.xlu1 %108  ;;  %v107_v11 = vpop.permute.xlu0 %106  ;;  %v990_v12 = vpack.c.bf16 %v368_v7, %v366_v9  ;;  %v992_v13 = vpack.c.bf16 %v367_v6, %v365_v8 }
  0xe8   :  { %991 = vmatprep.subr.bf16.mxu0 %v990_v12 }
  0xe9   :  { %993 = vmatpush1.bf16.msra.mxu0 %v992_v13 }
  0xea   :  { %v141_v14 = vpop.permute.xlu1 %140  ;;  %v139_v15 = vpop.permute.xlu0 %138 }
  0xeb   :  { %v166_v16 = vsel %vm156_vm0, %v109_v10, %v141_v14  ;;  %v182_v19 = vsel %vm156_vm0, %v141_v14, %v109_v10  ;;  %v165_v4 = vsel %vm156_vm0, %v107_v11, %v139_v15  ;;  %v181_v18 = vsel %vm156_vm0, %v139_v15, %v107_v11 }
  0xec   :  { %v338_v20 = vmul.f32 %v1418_v22, %v182_v19  ;;  %v339_v21 = vmul.f32 %v1418_v22, %v166_v16  ;;  %v336_v23 = vmul.f32 %v1418_v22, %v181_v18  ;;  %v337_v24 = vmul.f32 %v1418_v22, %v165_v4 }
  0xee   :  { %v208_v25 = vpop.permute.xlu1 %207  ;;  %v206_v26 = vpop.permute.xlu0 %205  ;;  %v962_v28 = vpack.c.bf16 %v339_v21, %v337_v24  ;;  %v964_v29 = vpack.c.bf16 %v338_v20, %v336_v23 }
  0xf0   :  { %963 = vmatprep.subr.bf16.mxu1 %v962_v28 }
  0xf1   :  { %965 = vmatpush1.bf16.msra.mxu1 %v964_v29 }
  0xf2   :  { %v240_v30 = vpop.permute.xlu1 %239  ;;  %v238_v31 = vpop.permute.xlu0 %237 }
  0xf3   :  { %v263_v32 = vsel %vm253_vm1, %v208_v25, %v240_v30  ;;  %v279_v33 = vsel %vm253_vm1, %v240_v30, %v208_v25  ;;  %v262_v34 = vsel %vm253_vm1, %v206_v26, %v238_v31  ;;  %v278_v35 = vsel %vm253_vm1, %v238_v31, %v206_v26 }
  0xf4   :  { %v371_v36 = vmul.f32 %v1444_v38, %v279_v33  ;;  %v372_v37 = vmul.f32 %v1444_v38, %v263_v32  ;;  %v369_v39 = vmul.f32 %v1444_v38, %v278_v35  ;;  %v370_v40 = vmul.f32 %v1444_v38, %v262_v34 }
  0xf6   :  { %v113_v41 = vpop.permute.xlu1 %112  ;;  %v111_v42 = vpop.permute.xlu0 %110  ;;  %v994_v43 = vpack.c.bf16 %v372_v37, %v370_v40  ;;  %v996_v44 = vpack.c.bf16 %v371_v36, %v369_v39 }
  0xf8   :  { %995 = vmatprep.subr.bf16.mxu0 %v994_v43 }
  0xf9   :  { %997 = vmatpush1.bf16.msra.mxu0 %v996_v44 }
  0xfa   :  { %v145_v45 = vpop.permute.xlu1 %144  ;;  %v143_v46 = vpop.permute.xlu0 %142 }
  0xfb   :  { %v168_v47 = vsel %vm156_vm0, %v113_v41, %v145_v45  ;;  %v184_v48 = vsel %vm156_vm0, %v145_v45, %v113_v41  ;;  %v167_v49 = vsel %vm156_vm0, %v111_v42, %v143_v46  ;;  %v183_v50 = vsel %vm156_vm0, %v143_v46, %v111_v42 }
  0xfc   :  { %v342_v51 = vmul.f32 %v1418_v22, %v184_v48  ;;  %v343_v52 = vmul.f32 %v1418_v22, %v168_v47  ;;  %v340_v53 = vmul.f32 %v1418_v22, %v183_v50  ;;  %v341_v54 = vmul.f32 %v1418_v22, %v167_v49 }
  0xfe   :  { %v212_v55 = vpop.permute.xlu1 %211  ;;  %v210_v56 = vpop.permute.xlu0 %209  ;;  %v966_v57 = vpack.c.bf16 %v343_v52, %v341_v54  ;;  %v968_v58 = vpack.c.bf16 %v342_v51, %v340_v53 }
 0x100   :  { %967 = vmatprep.subr.bf16.mxu1 %v966_v57 }
 0x101   :  { %969 = vmatpush1.bf16.msra.mxu1 %v968_v58  ;;  %v389_v58 = vld [vmem:[#allocation7 + $0x20] sm:$0xff] }
 0x102   :  { %v244_v59 = vpop.permute.xlu1 %243  ;;  %v242_v60 = vpop.permute.xlu0 %241 }
 0x103   :  { %v265_v61 = vsel %vm253_vm1, %v212_v55, %v244_v59  ;;  %v281_v62 = vsel %vm253_vm1, %v244_v59, %v212_v55  ;;  %v264_v63 = vsel %vm253_vm1, %v210_v56, %v242_v60  ;;  %v280_v0 = vsel %vm253_vm1, %v242_v60, %v210_v56  ;;  %v385_v55 = vld [vmem:[#allocation7] sm:$0xff] }
 0x104   :  { %v375_v1 = vmul.f32 %v1444_v38, %v281_v62  ;;  %v376_v2 = vmul.f32 %v1444_v38, %v265_v61  ;;  %v373_v3 = vmul.f32 %v1444_v38, %v280_v0  ;;  %v374_v5 = vmul.f32 %v1444_v38, %v264_v63 }
 0x106   :  { %v117_v6 = vpop.permute.xlu1 %116  ;;  %v115_v7 = vpop.permute.xlu0 %114  ;;  %v998_v8 = vpack.c.bf16 %v376_v2, %v374_v5  ;;  %v1000_v9 = vpack.c.bf16 %v375_v1, %v373_v3  ;;  %v388_v2 = vld [vmem:[#allocation7 + $0x18] sm:$0xff] }
 0x108   :  { %999 = vmatprep.subr.bf16.mxu0 %v998_v8  ;;  %v395_v8 = vld [vmem:[#allocation7 + $0x50] sm:$0xff] }
 0x109   :  { %1001 = vmatpush1.bf16.msra.mxu0 %v1000_v9  ;;  %v390_v9 = vld [vmem:[#allocation7 + $0x28] sm:$0xff] }
 0x10a   :  { %v149_v10 = vpop.permute.xlu1 %148  ;;  %v147_v11 = vpop.permute.xlu0 %146 }
 0x10b   :  { %v170_v12 = vsel %vm156_vm0, %v117_v6, %v149_v10  ;;  %v186_v13 = vsel %vm156_vm0, %v149_v10, %v117_v6  ;;  %v169_v14 = vsel %vm156_vm0, %v115_v7, %v147_v11  ;;  %v185_v15 = vsel %vm156_vm0, %v147_v11, %v115_v7  ;;  %v392_v6 = vld [vmem:[#allocation7 + $0x38] sm:$0xff]  ;;  %v387_v7 = vld [vmem:[#allocation7 + $0x10] sm:$0xff]  ;;  %v398_v10 = vld [vmem:[#allocation7 + $0x68] sm:$0xff] }
 0x10c   :  { %v346_v16 = vmul.f32 %v1418_v22, %v186_v13  ;;  %v347_v19 = vmul.f32 %v1418_v22, %v170_v12  ;;  %v344_v4 = vmul.f32 %v1418_v22, %v185_v15  ;;  %v345_v18 = vmul.f32 %v1418_v22, %v169_v14  ;;  %v393_v11 = vld [vmem:[#allocation7 + $0x40] sm:$0xff]  ;;  %v396_v14 = vld [vmem:[#allocation7 + $0x58] sm:$0xff] }
 0x10d   :  { %v397_v12 = vld [vmem:[#allocation7 + $0x60] sm:$0xff]  ;;  %v400_v15 = vld [vmem:[#allocation7 + $0x78] sm:$0xff] }
 0x10e   :  { %v216_v20 = vpop.permute.xlu1 %215  ;;  %v214_v21 = vpop.permute.xlu0 %213  ;;  %v970_v23 = vpack.c.bf16 %v347_v19, %v345_v18  ;;  %v972_v24 = vpack.c.bf16 %v346_v16, %v344_v4  ;;  %v401_v13 = vld [vmem:[#allocation7 + $0x80] sm:$0xff]  ;;  %v404_v16 = vld [vmem:[#allocation7 + $0x98] sm:$0xff]  ;;  %v399_v19 = vld [vmem:[#allocation7 + $0x70] sm:$0xff] }
 0x10f   :  { %v403_v4 = vld [vmem:[#allocation7 + $0x90] sm:$0xff] }
 0x110   :  { %971 = vmatprep.subr.bf16.mxu1 %v970_v23  ;;  %v407_v18 = vld [vmem:[#allocation7 + $0xb0] sm:$0xff]  ;;  %v410_v23 = vld [vmem:[#allocation7 + $0xc8] sm:$0xff] }
 0x111   :  { %973 = vmatpush1.bf16.msra.mxu1 %v972_v24  ;;  %v405_v24 = vld [vmem:[#allocation7 + $0xa0] sm:$0xff] }
 0x112   :  { %v248_v25 = vpop.permute.xlu1 %247  ;;  %v246_v26 = vpop.permute.xlu0 %245 }
 0x113   :  { %v267_v28 = vsel %vm253_vm1, %v216_v20, %v248_v25  ;;  %v283_v29 = vsel %vm253_vm1, %v248_v25, %v216_v20  ;;  %v266_v30 = vsel %vm253_vm1, %v214_v21, %v246_v26  ;;  %v282_v31 = vsel %vm253_vm1, %v246_v26, %v214_v21  ;;  %v402_v20 = vld [vmem:[#allocation7 + $0x88] sm:$0xff]  ;;  %v409_v25 = vld [vmem:[#allocation7 + $0xc0] sm:$0xff] }
 0x114   :  { %v379_v32 = vmul.f32 %v1444_v38, %v283_v29  ;;  %v380_v33 = vmul.f32 %v1444_v38, %v267_v28  ;;  %v377_v34 = vmul.f32 %v1444_v38, %v282_v31  ;;  %v378_v35 = vmul.f32 %v1444_v38, %v266_v30  ;;  %v406_v21 = vld [vmem:[#allocation7 + $0xa8] sm:$0xff]  ;;  %v413_v26 = vld [vmem:[#allocation7 + $0xe0] sm:$0xff]  ;;  %v408_v28 = vld [vmem:[#allocation7 + $0xb8] sm:$0xff] }
 0x115   :  { %v412_v29 = vld [vmem:[#allocation7 + $0xd8] sm:$0xff]  ;;  %v411_v31 = vld [vmem:[#allocation7 + $0xd0] sm:$0xff] }
 0x116   :  { %v121_v36 = vpop.permute.xlu1 %120  ;;  %v119_v37 = vpop.permute.xlu0 %118  ;;  %v1002_v39 = vpack.c.bf16 %v380_v33, %v378_v35  ;;  %v1004_v40 = vpack.c.bf16 %v379_v32, %v377_v34  ;;  %v416_v30 = vld [vmem:[#allocation7 + $0xf8] sm:$0xff]  ;;  %v415_v32 = vld [vmem:[#allocation7 + $0xf0] sm:$0xff]  ;;  %v414_v34 = vld [vmem:[#allocation7 + $0xe8] sm:$0xff] }
 0x117   :  { %v419_v33 = vld [vmem:[#allocation7 + $0x110] sm:$0xff]  ;;  %v418_v35 = vld [vmem:[#allocation7 + $0x108] sm:$0xff] }
 0x118   :  { %1003 = vmatprep.subr.bf16.mxu0 %v1002_v39  ;;  %v421_v39 = vld [vmem:[#allocation7 + $0x120] sm:$0xff] }
 0x119   :  { %1005 = vmatpush1.bf16.msra.mxu0 %v1004_v40  ;;  %v425_v40 = vld [vmem:[#allocation7 + $0x140] sm:$0xff] }
 0x11a   :  { %v153_v41 = vpop.permute.xlu1 %152  ;;  %v151_v42 = vpop.permute.xlu0 %150 }
 0x11b   :  { %v172_v43 = vsel %vm156_vm0, %v121_v36, %v153_v41  ;;  %v188_v44 = vsel %vm156_vm0, %v153_v41, %v121_v36  ;;  %v171_v45 = vsel %vm156_vm0, %v119_v37, %v151_v42  ;;  %v187_v46 = vsel %vm156_vm0, %v151_v42, %v119_v37  ;;  %v422_v36 = vld [vmem:[#allocation7 + $0x128] sm:$0xff]  ;;  %v417_v37 = vld [vmem:[#allocation7 + $0x100] sm:$0xff]  ;;  %v420_v41 = vld [vmem:[#allocation7 + $0x118] sm:$0xff] }
 0x11c   :  { %v350_v47 = vmul.f32 %v1418_v22, %v188_v44  ;;  %v351_v48 = vmul.f32 %v1418_v22, %v172_v43  ;;  %v348_v49 = vmul.f32 %v1418_v22, %v187_v46  ;;  %v349_v50 = vmul.f32 %v1418_v22, %v171_v45  ;;  %v424_v42 = vld [vmem:[#allocation7 + $0x138] sm:$0xff]  ;;  %v423_v44 = vld [vmem:[#allocation7 + $0x130] sm:$0xff] }
 0x11d   :  { %v428_v43 = vld [vmem:[#allocation7 + $0x158] sm:$0xff]  ;;  %v427_v45 = vld [vmem:[#allocation7 + $0x150] sm:$0xff] }
 0x11e   :  { %v220_v51 = vpop.permute.xlu1 %219  ;;  %v218_v52 = vpop.permute.xlu0 %217  ;;  %v974_v53 = vpack.c.bf16 %v351_v48, %v349_v50  ;;  %v976_v54 = vpack.c.bf16 %v350_v47, %v348_v49  ;;  %v431_v46 = vld [vmem:[#allocation7 + $0x170] sm:$0xff]  ;;  %v426_v47 = vld [vmem:[#allocation7 + $0x148] sm:$0xff]  ;;  %v429_v49 = vld [vmem:[#allocation7 + $0x160] sm:$0xff] }
 0x11f   :  { %v430_v48 = vld [vmem:[#allocation7 + $0x168] sm:$0xff]  ;;  %v432_v50 = vld [vmem:[#allocation7 + $0x178] sm:$0xff] }
 0x120   :  { %975 = vmatprep.subr.bf16.mxu1 %v974_v53  ;;  %v761_v53 = vld [vmem:[#allocation6] sm:$0xff] }
 0x121   :  { %977 = vmatpush1.bf16.msra.mxu1 %v976_v54  ;;  %v1641_v54 = vstv %s54_s25 }
 0x122   :  { %v252_v56 = vpop.permute.xlu1 %251  ;;  %v250_v57 = vpop.permute.xlu0 %249 }
 0x123   :  { %v269_v59 = vsel %vm253_vm1, %v220_v51, %v252_v56  ;;  %v285_v60 = vsel %vm253_vm1, %v252_v56, %v220_v51  ;;  %v268_v61 = vsel %vm253_vm1, %v218_v52, %v250_v57  ;;  %v284_v22 = vsel %vm253_vm1, %v250_v57, %v218_v52  ;;  %v762_v56 = vld [vmem:[#allocation6 + $0x8] sm:$0xff] }
 0x124   :  { %v383_v62 = vmul.f32 %v1444_v38, %v285_v60  ;;  %v384_v63 = vmul.f32 %v1444_v38, %v269_v59  ;;  %v381_v0 = vmul.f32 %v1444_v38, %v284_v22  ;;  %v382_v1 = vmul.f32 %v1444_v38, %v268_v61  ;;  %498 = vmatmul.mubr.f32.vlgmr.msra.gmra.mrb[0].mxu1 %v385_v55  ;;  %v394_v38 = vld [vmem:[#allocation7 + $0x48] sm:$0xff]  ;;  %v763_v61 = vld [vmem:[#allocation6 + $0x10] sm:$0xff] }
 0x125   :  { %503 = vmatprep.mubr.f32.mxu1 %v389_v58  ;;  %v794_v58 = vmul.f32 %v1641_v54, %v761_v53  ;;  %v795_v60 = vmul.f32 %v1641_v54, %v762_v56 }
 0x126   :  { %v1006_v3 = vpack.c.bf16 %v384_v63, %v382_v1  ;;  %v1008_v5 = vpack.c.bf16 %v383_v62, %v381_v0  ;;  %v764_v63 = vld [vmem:[#allocation6 + $0x18] sm:$0xff] }
 0x128   :  { %1007 = vmatprep.subr.bf16.mxu0 %v1006_v3  ;;  %504 = vmatmul.mubr.f32.gmra.mrb[2].mxu1 %v388_v2  ;;  %v796_v3 = vmul.f32 %v1641_v54, %v763_v61 }
 0x129   :  { %1009 = vmatpush1.bf16.msra.mxu0 %v1008_v5  ;;  %509 = vmatprep.mubr.f32.mxu1 %v392_v6 }
 0x12c   :  { %659 = vmatmul.mubr.f32.vlgmr.msra.gmra.mrb[0].mxu0 %v387_v7  ;;  %510 = vmatmul.mubr.f32.gmra.mrb[4].mxu1 %v391_v17  ;;  %v797_v7 = vmul.f32 %v1641_v54, %v764_v63  ;;  %v765_v17 = vld [vmem:[#allocation6 + $0x20] sm:$0xff] }
 0x12d   :  { %664 = vmatprep.mubr.f32.mxu0 %v1146_v27  ;;  %515 = vmatprep.mubr.f32.mxu1 %v395_v8 }
 0x130   :  { %665 = vmatmul.mubr.f32.gmra.mrb[2].mxu0 %v390_v9  ;;  %516 = vmatmul.mubr.f32.gmra.mrb[6].mxu1 %v394_v38 }
 0x131   :  { %670 = vmatprep.mubr.f32.mxu0 %v1146_v27  ;;  %521 = vmatprep.mubr.f32.mxu1 %v398_v10  ;;  %v766_v10 = vld [vmem:[#allocation6 + $0x28] sm:$0xff] }
 0x134   :  { %671 = vmatmul.mubr.f32.gmra.mrb[4].mxu0 %v393_v11  ;;  %522 = vmatmul.mubr.f32.gmra.mrb[8].mxu1 %v397_v12 }
 0x135   :  { %676 = vmatprep.mubr.f32.mxu0 %v1146_v27  ;;  %527 = vmatprep.mubr.f32.mxu1 %v401_v13 }
 0x138   :  { %677 = vmatmul.mubr.f32.gmra.mrb[6].mxu0 %v396_v14  ;;  %528 = vmatmul.mubr.f32.gmra.mrb[10].mxu1 %v400_v15  ;;  %v798_v14 = vmul.f32 %v1641_v54, %v765_v17 }
 0x139   :  { %682 = vmatprep.mubr.f32.mxu0 %v1146_v27  ;;  %533 = vmatprep.mubr.f32.mxu1 %v404_v16 }
 0x13c   :  { %683 = vmatmul.mubr.f32.gmra.mrb[8].mxu0 %v399_v19  ;;  %534 = vmatmul.mubr.f32.gmra.mrb[12].mxu1 %v403_v4  ;;  %v799_v19 = vmul.f32 %v1641_v54, %v766_v10  ;;  %v767_v4 = vld [vmem:[#allocation6 + $0x30] sm:$0xff] }
 0x13d   :  { %688 = vmatprep.mubr.f32.mxu0 %v1146_v27  ;;  %539 = vmatprep.mubr.f32.mxu1 %v407_v18 }
 0x140   :  { %689 = vmatmul.mubr.f32.gmra.mrb[10].mxu0 %v402_v20  ;;  %540 = vmatmul.mubr.f32.gmra.mrb[14].mxu1 %v406_v21 }
 0x141   :  { %694 = vmatprep.mubr.f32.mxu0 %v1146_v27  ;;  %545 = vmatprep.mubr.f32.mxu1 %v410_v23  ;;  %v768_v23 = vld [vmem:[#allocation6 + $0x38] sm:$0xff] }
 0x144   :  { %695 = vmatmul.mubr.f32.gmra.mrb[12].mxu0 %v405_v24  ;;  %546 = vmatmul.mubr.f32.gmra.mrb[16].mxu1 %v409_v25 }
 0x145   :  { %700 = vmatprep.mubr.f32.mxu0 %v1146_v27  ;;  %551 = vmatprep.mubr.f32.mxu1 %v413_v26 }
 0x148   :  { %701 = vmatmul.mubr.f32.gmra.mrb[14].mxu0 %v408_v28  ;;  %552 = vmatmul.mubr.f32.gmra.mrb[18].mxu1 %v412_v29  ;;  %v800_v28 = vmul.f32 %v1641_v54, %v767_v4 }
 0x149   :  { %706 = vmatprep.mubr.f32.mxu0 %v1146_v27  ;;  %557 = vmatprep.mubr.f32.mxu1 %v416_v30 }
 0x14c   :  { %707 = vmatmul.mubr.f32.gmra.mrb[16].mxu0 %v411_v31  ;;  %558 = vmatmul.mubr.f32.gmra.mrb[20].mxu1 %v415_v32  ;;  %v801_v31 = vmul.f32 %v1641_v54, %v768_v23  ;;  %v769_v32 = vld [vmem:[#allocation6 + $0x40] sm:$0xff] }
 0x14d   :  { %712 = vmatprep.mubr.f32.mxu0 %v1146_v27  ;;  %563 = vmatprep.mubr.f32.mxu1 %v419_v33 }
 0x150   :  { %713 = vmatmul.mubr.f32.gmra.mrb[18].mxu0 %v414_v34  ;;  %564 = vmatmul.mubr.f32.gmra.mrb[22].mxu1 %v418_v35 }
 0x151   :  { %718 = vmatprep.mubr.f32.mxu0 %v1146_v27  ;;  %569 = vmatprep.mubr.f32.mxu1 %v422_v36  ;;  %v770_v36 = vld [vmem:[#allocation6 + $0x48] sm:$0xff] }
 0x154   :  { %719 = vmatmul.mubr.f32.gmra.mrb[20].mxu0 %v417_v37  ;;  %570 = vmatmul.mubr.f32.gmra.mrb[24].mxu1 %v421_v39 }
 0x155   :  { %724 = vmatprep.mubr.f32.mxu0 %v1146_v27  ;;  %575 = vmatprep.mubr.f32.mxu1 %v425_v40 }
 0x158   :  { %725 = vmatmul.mubr.f32.gmra.mrb[22].mxu0 %v420_v41  ;;  %576 = vmatmul.mubr.f32.gmra.mrb[26].mxu1 %v424_v42  ;;  %v802_v41 = vmul.f32 %v1641_v54, %v769_v32 }
 0x159   :  { %730 = vmatprep.mubr.f32.mxu0 %v1146_v27  ;;  %581 = vmatprep.mubr.f32.mxu1 %v428_v43 }
 0x15c   :  { %731 = vmatmul.mubr.f32.gmra.mrb[24].mxu0 %v423_v44  ;;  %582 = vmatmul.mubr.f32.gmra.mrb[28].mxu1 %v427_v45  ;;  %v803_v44 = vmul.f32 %v1641_v54, %v770_v36  ;;  %v771_v45 = vld [vmem:[#allocation6 + $0x50] sm:$0xff] }
 0x15d   :  { %736 = vmatprep.mubr.f32.mxu0 %v1146_v27  ;;  %587 = vmatprep.mubr.f32.mxu1 %v431_v46  ;;  %v804_v53 = vmul.f32 %v1641_v54, %v771_v45 }
 0x160   :  { %737 = vmatmul.mubr.f32.gmra.mrb[26].mxu0 %v426_v47  ;;  %588 = vmatmul.mubr.f32.gmra.mrb[30].mxu1 %v430_v48 }
 0x161   :  { %742 = vmatprep.mubr.f32.mxu0 %v1146_v27 }
 0x164   :  { %743 = vmatmul.mubr.f32.gmra.mrb[28].mxu0 %v429_v49  ;;  %v772_v49 = vld [vmem:[#allocation6 + $0x58] sm:$0xff] }
 0x165   :  { %748 = vmatprep.mubr.f32.mxu0 %v1146_v27 }
 0x168   :  { %749 = vmatmul.mubr.f32.gmra.mrb[30].mxu0 %v432_v50 }
 0x1f7   :  { %v499_v51 = vpop.f32.mrb[0].mxu1 }
 0x1f8   :  { %v501_v52 = vpop.f32.mrb[1].mxu1 }
 0x1fb   :  { %v505_v55 = vpop.f32.mrb[2].mxu1 }
 0x1fc   :  { %v507_v57 = vpop.f32.mrb[3].mxu1 }
 0x1ff   :  { %v660_v59 = vpop.f32.mrb[0].mxu0  ;;  %v511_v22 = vpop.f32.mrb[4].mxu1 }
 0x200   :  { %v661_v62 = vadd.f32 %v660_v59, %v499_v51  ;;  %v662_v27 = vpop.f32.mrb[1].mxu0  ;;  %v513_v0 = vpop.f32.mrb[5].mxu1 }
 0x201   :  { %v663_v1 = vadd.f32 %v662_v27, %v501_v52 }
 0x202   :  { %v826_v2 = vadd.f32 %v794_v58, %v661_v62  ;;  %v773_v58 = vld [vmem:[#allocation6 + $0x60] sm:$0xff] }
 0x203   :  { %v827_v5 = vadd.f32 %v795_v60, %v663_v1  ;;  %v666_v6 = vpop.f32.mrb[2].mxu0  ;;  %v517_v8 = vpop.f32.mrb[6].mxu1 }
 0x204   :  { %858 = vst [vmem:[#allocation9] sm:$0xff] %v826_v2  ;;  %v667_v9 = vadd.f32 %v666_v6, %v505_v55  ;;  %v668_v38 = vpop.f32.mrb[3].mxu0  ;;  %v519_v11 = vpop.f32.mrb[7].mxu1 }
 0x205   :  { %859 = vst [vmem:[#allocation9 + $0x8] sm:$0xff] %v827_v5  ;;  %v669_v12 = vadd.f32 %v668_v38, %v507_v57  ;;  %v805_v57 = vmul.f32 %v1641_v54, %v772_v49  ;;  %v775_v5 = vld [vmem:[#allocation6 + $0x70] sm:$0xff] }
 0x206   :  { %v828_v13 = vadd.f32 %v796_v3, %v667_v9 }
 0x207   :  { %v829_v15 = vadd.f32 %v797_v7, %v669_v12  ;;  %v672_v16 = vpop.f32.mrb[4].mxu0  ;;  %v523_v18 = vpop.f32.mrb[8].mxu1 }
 0x208   :  { %860 = vst [vmem:[#allocation9 + $0x10] sm:$0xff] %v828_v13  ;;  %v673_v20 = vadd.f32 %v672_v16, %v511_v22  ;;  %v674_v21 = vpop.f32.mrb[5].mxu0  ;;  %v525_v24 = vpop.f32.mrb[9].mxu1  ;;  %v774_v22 = vld [vmem:[#allocation6 + $0x68] sm:$0xff] }
 0x209   :  { %861 = vst [vmem:[#allocation9 + $0x18] sm:$0xff] %v829_v15  ;;  %v675_v25 = vadd.f32 %v674_v21, %v513_v0  ;;  %v806_v0 = vmul.f32 %v1641_v54, %v773_v58  ;;  %v807_v3 = vmul.f32 %v1641_v54, %v774_v22  ;;  %v777_v15 = vld [vmem:[#allocation6 + $0x80] sm:$0xff] }
 0x20a   :  { %v830_v26 = vadd.f32 %v798_v14, %v673_v20 }
 0x20b   :  { %v831_v29 = vadd.f32 %v799_v19, %v675_v25  ;;  %v678_v30 = vpop.f32.mrb[6].mxu0  ;;  %v529_v33 = vpop.f32.mrb[10].mxu1 }
 0x20c   :  { %862 = vst [vmem:[#allocation9 + $0x20] sm:$0xff] %v830_v26  ;;  %v679_v34 = vadd.f32 %v678_v30, %v517_v8  ;;  %v680_v35 = vpop.f32.mrb[7].mxu0  ;;  %v531_v37 = vpop.f32.mrb[11].mxu1  ;;  %v776_v8 = vld [vmem:[#allocation6 + $0x78] sm:$0xff] }
 0x20d   :  { %863 = vst [vmem:[#allocation9 + $0x28] sm:$0xff] %v831_v29  ;;  %v681_v39 = vadd.f32 %v680_v35, %v519_v11  ;;  %v808_v11 = vmul.f32 %v1641_v54, %v775_v5  ;;  %v809_v14 = vmul.f32 %v1641_v54, %v776_v8  ;;  %v779_v29 = vld [vmem:[#allocation6 + $0x90] sm:$0xff] }
 0x20e   :  { %v832_v40 = vadd.f32 %v800_v28, %v679_v34 }
 0x20f   :  { %v833_v42 = vadd.f32 %v801_v31, %v681_v39  ;;  %v684_v43 = vpop.f32.mrb[8].mxu0  ;;  %v535_v46 = vpop.f32.mrb[12].mxu1 }
 0x210   :  { %864 = vst [vmem:[#allocation9 + $0x30] sm:$0xff] %v832_v40  ;;  %v685_v47 = vadd.f32 %v684_v43, %v523_v18  ;;  %v686_v48 = vpop.f32.mrb[9].mxu0  ;;  %v537_v50 = vpop.f32.mrb[13].mxu1  ;;  %v778_v18 = vld [vmem:[#allocation6 + $0x88] sm:$0xff] }
 0x211   :  { %865 = vst [vmem:[#allocation9 + $0x38] sm:$0xff] %v833_v42  ;;  %v687_v51 = vadd.f32 %v686_v48, %v525_v24  ;;  %v810_v24 = vmul.f32 %v1641_v54, %v777_v15  ;;  %v811_v28 = vmul.f32 %v1641_v54, %v778_v18  ;;  %v781_v42 = vld [vmem:[#allocation6 + $0xa0] sm:$0xff] }
 0x212   :  { %v834_v52 = vadd.f32 %v802_v41, %v685_v47 }
 0x213   :  { %v835_v55 = vadd.f32 %v803_v44, %v687_v51  ;;  %v690_v56 = vpop.f32.mrb[10].mxu0  ;;  %v541_v59 = vpop.f32.mrb[14].mxu1 }
 0x214   :  { %866 = vst [vmem:[#allocation9 + $0x40] sm:$0xff] %v834_v52  ;;  %v691_v60 = vadd.f32 %v690_v56, %v529_v33  ;;  %v692_v61 = vpop.f32.mrb[11].mxu0  ;;  %v543_v62 = vpop.f32.mrb[15].mxu1  ;;  %v780_v33 = vld [vmem:[#allocation6 + $0x98] sm:$0xff] }
 0x215   :  { %867 = vst [vmem:[#allocation9 + $0x48] sm:$0xff] %v835_v55  ;;  %v693_v27 = vadd.f32 %v692_v61, %v531_v37  ;;  %v812_v37 = vmul.f32 %v1641_v54, %v779_v29  ;;  %v813_v41 = vmul.f32 %v1641_v54, %v780_v33  ;;  %v783_v55 = vld [vmem:[#allocation6 + $0xb0] sm:$0xff] }
 0x216   :  { %v836_v63 = vadd.f32 %v804_v53, %v691_v60 }
 0x217   :  { %v837_v1 = vadd.f32 %v805_v57, %v693_v27  ;;  %v696_v2 = vpop.f32.mrb[12].mxu0  ;;  %v547_v6 = vpop.f32.mrb[16].mxu1 }
 0x218   :  { %868 = vst [vmem:[#allocation9 + $0x50] sm:$0xff] %v836_v63  ;;  %v697_v7 = vadd.f32 %v696_v2, %v535_v46  ;;  %v698_v17 = vpop.f32.mrb[13].mxu0  ;;  %v549_v9 = vpop.f32.mrb[17].mxu1  ;;  %v782_v46 = vld [vmem:[#allocation6 + $0xa8] sm:$0xff] }
 0x219   :  { %869 = vst [vmem:[#allocation9 + $0x58] sm:$0xff] %v837_v1  ;;  %v699_v38 = vadd.f32 %v698_v17, %v537_v50  ;;  %v814_v50 = vmul.f32 %v1641_v54, %v781_v42  ;;  %v815_v53 = vmul.f32 %v1641_v54, %v782_v46  ;;  %v785_v1 = vld [vmem:[#allocation6 + $0xc0] sm:$0xff]  ;;  %v792_v42 = vld [vmem:[#allocation6 + $0xf8] sm:$0xff] }
 0x21a   :  { %v838_v10 = vadd.f32 %v806_v0, %v697_v7 }
 0x21b   :  { %v839_v12 = vadd.f32 %v807_v3, %v699_v38  ;;  %v702_v13 = vpop.f32.mrb[14].mxu0  ;;  %v553_v16 = vpop.f32.mrb[18].mxu1 }
 0x21c   :  { %870 = vst [vmem:[#allocation9 + $0x60] sm:$0xff] %v838_v10  ;;  %v703_v19 = vadd.f32 %v702_v13, %v541_v59  ;;  %v704_v4 = vpop.f32.mrb[15].mxu0  ;;  %v555_v20 = vpop.f32.mrb[19].mxu1  ;;  %v784_v59 = vld [vmem:[#allocation6 + $0xb8] sm:$0xff] }
 0x21d   :  { %871 = vst [vmem:[#allocation9 + $0x68] sm:$0xff] %v839_v12  ;;  %v705_v21 = vadd.f32 %v704_v4, %v543_v62  ;;  %v816_v62 = vmul.f32 %v1641_v54, %v783_v55  ;;  %v817_v0 = vmul.f32 %v1641_v54, %v784_v59  ;;  %v787_v12 = vld [vmem:[#allocation6 + $0xd0] sm:$0xff] }
 0x21e   :  { %v840_v23 = vadd.f32 %v808_v11, %v703_v19 }
 0x21f   :  { %v841_v25 = vadd.f32 %v809_v14, %v705_v21  ;;  %v708_v26 = vpop.f32.mrb[16].mxu0  ;;  %v559_v30 = vpop.f32.mrb[20].mxu1 }
 0x220   :  { %872 = vst [vmem:[#allocation9 + $0x70] sm:$0xff] %v840_v23  ;;  %v709_v31 = vadd.f32 %v708_v26, %v547_v6  ;;  %v710_v32 = vpop.f32.mrb[17].mxu0  ;;  %v561_v34 = vpop.f32.mrb[21].mxu1  ;;  %v786_v6 = vld [vmem:[#allocation6 + $0xc8] sm:$0xff] }
 0x221   :  { %873 = vst [vmem:[#allocation9 + $0x78] sm:$0xff] %v841_v25  ;;  %v711_v35 = vadd.f32 %v710_v32, %v549_v9  ;;  %v818_v9 = vmul.f32 %v1641_v54, %v785_v1  ;;  %v819_v11 = vmul.f32 %v1641_v54, %v786_v6  ;;  %v789_v25 = vld [vmem:[#allocation6 + $0xe0] sm:$0xff] }
 0x222   :  { %v842_v36 = vadd.f32 %v810_v24, %v709_v31 }
 0x223   :  { %v843_v39 = vadd.f32 %v811_v28, %v711_v35  ;;  %v714_v40 = vpop.f32.mrb[18].mxu0  ;;  %v565_v43 = vpop.f32.mrb[22].mxu1 }
 0x224   :  { %874 = vst [vmem:[#allocation9 + $0x80] sm:$0xff] %v842_v36  ;;  %v715_v44 = vadd.f32 %v714_v40, %v553_v16  ;;  %v716_v45 = vpop.f32.mrb[19].mxu0  ;;  %v567_v47 = vpop.f32.mrb[23].mxu1  ;;  %v788_v16 = vld [vmem:[#allocation6 + $0xd8] sm:$0xff] }
 0x225   :  { %875 = vst [vmem:[#allocation9 + $0x88] sm:$0xff] %v843_v39  ;;  %v717_v48 = vadd.f32 %v716_v45, %v555_v20  ;;  %v820_v20 = vmul.f32 %v1641_v54, %v787_v12  ;;  %v821_v24 = vmul.f32 %v1641_v54, %v788_v16  ;;  %v791_v39 = vld [vmem:[#allocation6 + $0xf0] sm:$0xff] }
 0x226   :  { %v844_v49 = vadd.f32 %v812_v37, %v715_v44  ;;  %v824_v45 = vmul.f32 %v1641_v54, %v791_v39 }
 0x227   :  { %v845_v51 = vadd.f32 %v813_v41, %v717_v48  ;;  %v720_v52 = vpop.f32.mrb[20].mxu0  ;;  %v571_v56 = vpop.f32.mrb[24].mxu1  ;;  %v825_v48 = vmul.f32 %v1641_v54, %v792_v42 }
 0x228   :  { %876 = vst [vmem:[#allocation9 + $0x90] sm:$0xff] %v844_v49  ;;  %v721_v57 = vadd.f32 %v720_v52, %v559_v30  ;;  %v722_v58 = vpop.f32.mrb[21].mxu0  ;;  %v573_v60 = vpop.f32.mrb[25].mxu1  ;;  %v790_v30 = vld [vmem:[#allocation6 + $0xe8] sm:$0xff] }
 0x229   :  { %877 = vst [vmem:[#allocation9 + $0x98] sm:$0xff] %v845_v51  ;;  %v723_v61 = vadd.f32 %v722_v58, %v561_v34  ;;  %v822_v34 = vmul.f32 %v1641_v54, %v789_v25  ;;  %v823_v37 = vmul.f32 %v1641_v54, %v790_v30 }
 0x22a   :  { %v846_v22 = vadd.f32 %v814_v50, %v721_v57 }
 0x22b   :  { %v847_v27 = vadd.f32 %v815_v53, %v723_v61  ;;  %v726_v63 = vpop.f32.mrb[22].mxu0  ;;  %v577_v2 = vpop.f32.mrb[26].mxu1 }
 0x22c   :  { %878 = vst [vmem:[#allocation9 + $0xa0] sm:$0xff] %v846_v22  ;;  %v727_v3 = vadd.f32 %v726_v63, %v565_v43  ;;  %v728_v5 = vpop.f32.mrb[23].mxu0  ;;  %v579_v7 = vpop.f32.mrb[27].mxu1 }
 0x22d   :  { %879 = vst [vmem:[#allocation9 + $0xa8] sm:$0xff] %v847_v27  ;;  %v729_v17 = vadd.f32 %v728_v5, %v567_v47 }
 0x22e   :  { %v848_v8 = vadd.f32 %v816_v62, %v727_v3 }
 0x22f   :  { %v849_v38 = vadd.f32 %v817_v0, %v729_v17  ;;  %v732_v10 = vpop.f32.mrb[24].mxu0  ;;  %v583_v13 = vpop.f32.mrb[28].mxu1 }
 0x230   :  { %880 = vst [vmem:[#allocation9 + $0xb0] sm:$0xff] %v848_v8  ;;  %v733_v14 = vadd.f32 %v732_v10, %v571_v56  ;;  %v734_v15 = vpop.f32.mrb[25].mxu0  ;;  %v585_v19 = vpop.f32.mrb[29].mxu1 }
 0x231   :  { %881 = vst [vmem:[#allocation9 + $0xb8] sm:$0xff] %v849_v38  ;;  %v735_v4 = vadd.f32 %v734_v15, %v573_v60 }
 0x232   :  { %v850_v18 = vadd.f32 %v818_v9, %v733_v14 }
 0x233   :  { %v851_v21 = vadd.f32 %v819_v11, %v735_v4  ;;  %v738_v23 = vpop.f32.mrb[26].mxu0  ;;  %v589_v26 = vpop.f32.mrb[30].mxu1 }
 0x234   :  { %882 = vst [vmem:[#allocation9 + $0xc0] sm:$0xff] %v850_v18  ;;  %v739_v28 = vadd.f32 %v738_v23, %v577_v2  ;;  %v740_v29 = vpop.f32.mrb[27].mxu0  ;;  %v591_v31 = vpop.f32.mrb[31].mxu1 }
 0x235   :  { %883 = vst [vmem:[#allocation9 + $0xc8] sm:$0xff] %v851_v21  ;;  %v741_v32 = vadd.f32 %v740_v29, %v579_v7 }
 0x236   :  { %v852_v33 = vadd.f32 %v820_v20, %v739_v28 }
 0x237   :  { %v853_v35 = vadd.f32 %v821_v24, %v741_v32  ;;  %v744_v36 = vpop.f32.mrb[28].mxu0 }
 0x238   :  { %884 = vst [vmem:[#allocation9 + $0xd0] sm:$0xff] %v852_v33  ;;  %v745_v40 = vadd.f32 %v744_v36, %v583_v13  ;;  %v746_v41 = vpop.f32.mrb[29].mxu0 }
 0x239   :  { %885 = vst [vmem:[#allocation9 + $0xd8] sm:$0xff] %v853_v35  ;;  %v747_v43 = vadd.f32 %v746_v41, %v585_v19 }
 0x23a   :  { %v854_v44 = vadd.f32 %v822_v34, %v745_v40 }
 0x23b   :  { %v855_v46 = vadd.f32 %v823_v37, %v747_v43  ;;  %v750_v47 = vpop.f32.mrb[30].mxu0 }
 0x23c   :  { %886 = vst [vmem:[#allocation9 + $0xe0] sm:$0xff] %v854_v44  ;;  %v751_v49 = vadd.f32 %v750_v47, %v589_v26  ;;  %v752_v50 = vpop.f32.mrb[31].mxu0 }
 0x23d   :  { %887 = vst [vmem:[#allocation9 + $0xe8] sm:$0xff] %v855_v46  ;;  %v753_v51 = vadd.f32 %v752_v50, %v591_v31 }
 0x23e   :  { %v856_v52 = vadd.f32 %v824_v45, %v751_v49 }
 0x23f   :  { %v857_v53 = vadd.f32 %v825_v48, %v753_v51 }
 0x240   :  { %888 = vst [vmem:[#allocation9 + $0xf0] sm:$0xff] %v856_v52 }
 0x241   :  { %889 = vst [vmem:[#allocation9 + $0xf8] sm:$0xff] %v857_v53 }
 0x242   :  { %1118 = shalt.err (!%p1115_p9)
}
 0x243   :  { %s1119_s4 = scalar_lea.hbm %s1693_s3, 4096 }
 0x244   :  { %p1120_p10 = scmp.ne.s32.totalorder %s1693_s3, %s1119_s4  ;;  %p1123_p11 = scmp.lt.u32.totalorder %s1119_s4, %s1693_s3 }
 0x246   :  { %p1125_p12 = pnand %p1123_p11, %p1120_p10 }
 0x248   :  { %1128 = shalt.err (!%p1125_p12)
}
 0x249   :  { %901 = dma.vmem_to_hbm [thread:$0]  %s896_s27, 4096, %s1693_s3, [#allocation4], %s1139_s0, %s1139_s0, %s1140_s5  }
 0x24a   :  { %1135 = dma.done.wait [#allocation4], 4096  }
 0x24b   :  { %1136 = vsyncadd [#allocation4], 4294963200 }
 0x24c   :  { %905 = vsyncpa [#allocation3], 1 }
 0x24d   :  { %906 = vsyncpa [#allocation8], 1 }
 0x24e   :  { %907 = vsyncpa [#allocation4], 1 }
 0x24f   :  { %908 = vsyncpa [#allocation5], 1 }

</bundles_post_ra>
